<compile_context>
chip_gen: v5e
topology: v5e:2x2
jax: 0.10.0
libtpu: 0.0.40
codegen_flags: <defaults>
</compile_context>

<pallas_src>
import functools

import jax
import jax.numpy as jnp
from jax.experimental import pallas as pl


# ----------------------------- kernel helpers -------------------------------
def _encode(ids_col, table, wt, b, seq_len):
    """Embedding -> Linear -> max over sequence, fully in VMEM.

    ids_col: [R*S, 1] int32 token ids (sentence-major, then seq position)
    table:   [V, H]   embedding table (row 0 zeroed => padding_idx=0)
    wt:      [H, H]   pre-transposed linear weight (W.T)
    b:       [1, H]   bias
    returns  [R, H]   f32 sentence vectors
    """
    rs = ids_col.shape[0]
    v, h = table.shape
    r = rs // seq_len
    # Embedding gather as a one-hot matmul: MXU-friendly, avoids a dynamic
    # gather lowering.  TODO(synk): for large vocabularies the [RS, V] one-hot
    # will not fit VMEM; switch to a scalar-prefetch / DMA row-gather there.
    vocab_iota = jax.lax.broadcasted_iota(jnp.int32, (rs, v), 1)
    one_hot = (vocab_iota == ids_col).astype(jnp.float32)                  # [RS, V]
    emb = jnp.dot(one_hot, table, preferred_element_type=jnp.float32)      # [RS, H]
    y = jnp.dot(emb, wt, preferred_element_type=jnp.float32)               # [RS, H]
    # max_pool1d over the whole sequence == max over the seq axis.  Bias is
    # constant along seq, so it is added after the pool (exactly equivalent).
    pooled = jnp.max(y.reshape(r, seq_len, h), axis=1)                     # [R, H]
    return pooled + b


def _inv_norm(x):
    # 1 / max(||x||, 1e-12), matching torch F.normalize; rsqrt uses the EUP slot.
    ss = jnp.sum(x * x, axis=-1, keepdims=True)
    return jax.lax.rsqrt(jnp.maximum(ss, 1e-24))


# ------------------------------ Pallas kernels ------------------------------
def encoder_kernel(ids_ref, table_ref, wt_ref, b_ref, out_ref, *, seq_len):
    out_ref[...] = _encode(ids_ref[...], table_ref[...], wt_ref[...],
                           b_ref[...], seq_len).astype(out_ref.dtype)


def siamese_kernel(ids_ref, table_ref, wt_ref, b_ref, loss_ref, *,
                   seq_len, batch):
    # One matmul chain over all 3*B sentences, then the triplet loss epilogue.
    vecs = _encode(ids_ref[...], table_ref[...], wt_ref[...], b_ref[...],
                   seq_len)                                                # [3*B, H]
    a = vecs[:batch]                # vector1
    p = vecs[batch:2 * batch]       # vector2
    n = vecs[2 * batch:]            # vector3

    # cosine(a, x) = (a.x) * invnorm(a) * invnorm(x); per-row scalar rescale
    # instead of materializing three normalized [B, H] tensors.
    inv_a = _inv_norm(a)
    cos_ap = jnp.sum(a * p, axis=-1, keepdims=True) * inv_a * _inv_norm(p)  # [B,1]
    cos_an = jnp.sum(a * n, axis=-1, keepdims=True) * inv_a * _inv_norm(n)  # [B,1]
    # ap - an + 0.1  with  ap = 1 - cos_ap, an = 1 - cos_an
    diff = cos_an - cos_ap + 0.1                                            # [B,1]
    mask = (diff > 0.0).astype(jnp.float32)
    # torch.mean(diff[diff.gt(0)]) == sum(diff*mask)/sum(mask) (NaN if empty,
    # matching torch behavior).
    loss_ref[0, 0] = jnp.sum(diff * mask) / jnp.sum(mask)


# ------------------------------ JAX wrappers --------------------------------
@jax.jit
def sentence_encoder(token_ids, emb_table, W, b):
    """SentenceEncoder.forward: embedding -> linear -> max over seq (one call)."""
    B, S = token_ids.shape
    V, H = emb_table.shape
    ids_col = token_ids.reshape(B * S, 1).astype(jnp.int32)
    wt = W.T                      # hoisted one-time transpose outside the kernel
    return pl.pallas_call(
        functools.partial(encoder_kernel, seq_len=S),
        out_shape=jax.ShapeDtypeStruct((B, H), jnp.float32),
        in_specs=[
            pl.BlockSpec((B * S, 1), lambda: (0, 0)),
            pl.BlockSpec((V, H), lambda: (0, 0)),
            pl.BlockSpec((H, H), lambda: (0, 0)),
            pl.BlockSpec((1, H), lambda: (0, 0)),
        ],
        out_specs=pl.BlockSpec((B, H), lambda: (0, 0)),
    )(ids_col, emb_table, wt, b.reshape(1, H))


@jax.jit
def siamese_forward(s1, s2, s3, emb_table, W, b):
    """SiameseNetwork.forward(s1, s2, s3) -> scalar cosine triplet loss.

    One fused pallas_call: all three encoders + loss, no intermediate [B,H]
    HBM roundtrips, weights loaded into VMEM once.
    """
    B, S = s1.shape
    V, H = emb_table.shape
    ids = jnp.concatenate([s1, s2, s3], axis=0)            # [3*B, S]  (tiny, int32)
    ids_col = ids.reshape(3 * B * S, 1).astype(jnp.int32)
    wt = W.T
    loss = pl.pallas_call(
        functools.partial(siamese_kernel, seq_len=S, batch=B),
        out_shape=jax.ShapeDtypeStruct((1, 1), jnp.float32),
        in_specs=[
            pl.BlockSpec((3 * B * S, 1), lambda: (0, 0)),
            pl.BlockSpec((V, H), lambda: (0, 0)),
            pl.BlockSpec((H, H), lambda: (0, 0)),
            pl.BlockSpec((1, H), lambda: (0, 0)),
        ],
        out_specs=pl.BlockSpec((1, 1), lambda: (0, 0)),
    )(ids_col, emb_table, wt, b.reshape(1, H))
    return loss[0, 0]


# ------------------------------ pure-JAX reference ---------------------------
def _ref_encode(ids, emb_table, W, b):
    emb = emb_table[ids]                                    # [B,S,H]
    y = emb @ W.T + b                                       # [B,S,H]
    return jnp.max(y, axis=1)                               # [B,H]


def _ref_loss(a, p, n):
    def norm(x):
        return x / jnp.maximum(jnp.linalg.norm(x, axis=-1, keepdims=True), 1e-12)
    ap = 1.0 - jnp.sum(norm(a) * norm(p), axis=-1)
    an = 1.0 - jnp.sum(norm(a) * norm(n), axis=-1)
    diff = ap - an + 0.1
    m = (diff > 0.0).astype(jnp.float32)
    return jnp.sum(diff * m) / jnp.sum(m)


# --------------------------------- main --------------------------------------
if __name__ == "__main__":
    B, S, H, VOCAB = 2, 8, 32, 16

    key = jax.random.PRNGKey(0)
    k_emb, k_w, k_b, k_s1, k_s2, k_s3 = jax.random.split(key, 6)

    # Deterministic parameter init (shapes match nn.Embedding / nn.Linear).
    emb_table = jax.random.normal(k_emb, (VOCAB, H), dtype=jnp.float32)
    emb_table = emb_table.at[0].set(0.0)                   # padding_idx=0
    bound = 1.0 / (H ** 0.5)
    W = jax.random.uniform(k_w, (H, H), jnp.float32, -bound, bound)   # [out, in]
    b = jax.random.uniform(k_b, (H,), jnp.float32, -bound, bound)

    # Deterministic example inputs (three sentences of token ids).
    s1 = jax.random.randint(k_s1, (B, S), 0, VOCAB, dtype=jnp.int32)
    s2 = jax.random.randint(k_s2, (B, S), 0, VOCAB, dtype=jnp.int32)
    s3 = jax.random.randint(k_s3, (B, S), 0, VOCAB, dtype=jnp.int32)

    # Single-sentence branch (returns encoder vectors [B, H]).
    vec = sentence_encoder(s1, emb_table, W, b)
    jax.block_until_ready(vec)

    # Triplet branch (returns scalar loss) — one fused kernel launch.
    loss = siamese_forward(s1, s2, s3, emb_table, W, b)
    jax.block_until_ready(loss)

    # Correctness sanity check against a pure-JAX reference.
    vec_ref = _ref_encode(s1, emb_table, W, b)
    loss_ref = _ref_loss(_ref_encode(s1, emb_table, W, b),
                         _ref_encode(s2, emb_table, W, b),
                         _ref_encode(s3, emb_table, W, b))
    assert jnp.allclose(vec, vec_ref, atol=1e-5, rtol=1e-5), "encoder mismatch"
    assert jnp.allclose(loss, loss_ref, atol=1e-5, rtol=1e-5, equal_nan=True), \
        "loss mismatch"

    print("KERNEL_OK")
</pallas_src>

<mosaic_0001>
module attributes {stable_mosaic.version = 11 : i64} {
  func.func @encoder_kernel(%arg0: memref<16x1xi32, #tpu.memory_space<vmem>>, %arg1: memref<16x32xf32, #tpu.memory_space<vmem>>, %arg2: memref<32x32xf32, #tpu.memory_space<vmem>>, %arg3: memref<1x32xf32, #tpu.memory_space<vmem>>, %arg4: memref<2x32xf32, #tpu.memory_space<vmem>>) attributes {dimension_semantics = [], scalar_prefetch = 0 : i64, scratch_operands = 0 : i64, tpu.core_type = #tpu.core_type<tc>} {
    %c0 = arith.constant 0 : index
    %c0_0 = arith.constant 0 : index
    %0 = vector.load %arg0[%c0, %c0_0] : memref<16x1xi32, #tpu.memory_space<vmem>>, vector<16x1xi32>
    %c0_1 = arith.constant 0 : index
    %c0_2 = arith.constant 0 : index
    %1 = vector.load %arg1[%c0_1, %c0_2] : memref<16x32xf32, #tpu.memory_space<vmem>>, vector<16x32xf32>
    %c0_3 = arith.constant 0 : index
    %c0_4 = arith.constant 0 : index
    %2 = vector.load %arg2[%c0_3, %c0_4] : memref<32x32xf32, #tpu.memory_space<vmem>>, vector<32x32xf32>
    %c0_5 = arith.constant 0 : index
    %c0_6 = arith.constant 0 : index
    %3 = vector.load %arg3[%c0_5, %c0_6] : memref<1x32xf32, #tpu.memory_space<vmem>>, vector<1x32xf32>
    %4 = tpu.iota {dimensions = array<i32: 1>} : vector<16x16xi32>
    %5 = vector.broadcast %0 : vector<16x1xi32> to vector<16x16xi32>
    %6 = arith.cmpi eq, %4, %5 : vector<16x16xi32>
    %7 = arith.extui %6 : vector<16x16xi1> to vector<16x16xi32>
    %8 = arith.sitofp %7 : vector<16x16xi32> to vector<16x16xf32>
    %cst = arith.constant dense<0.000000e+00> : vector<16x32xf32>
    %9 = tpu.matmul %8, %1, %cst {dimension_numbers = #tpu.dot_dimension_numbers<[1], [0], [0], [1], [0, 0, 1, 1], [], []>} : vector<16x16xf32>, vector<16x32xf32>, vector<16x32xf32> -> vector<16x32xf32>
    %cst_7 = arith.constant dense<0.000000e+00> : vector<16x32xf32>
    %10 = tpu.matmul %9, %2, %cst_7 {dimension_numbers = #tpu.dot_dimension_numbers<[1], [0], [0], [1], [0, 0, 1, 1], [], []>} : vector<16x32xf32>, vector<32x32xf32>, vector<16x32xf32> -> vector<16x32xf32>
    %11 = vector.shape_cast %10 : vector<16x32xf32> to vector<2x8x32xf32>
    %cst_8 = arith.constant dense<0xFF800000> : vector<2x32xf32>
    %12 = vector.multi_reduction <maximumf>, %11, %cst_8 [1] : vector<2x8x32xf32> to vector<2x32xf32>
    %13 = vector.broadcast %3 : vector<1x32xf32> to vector<2x32xf32>
    %14 = arith.addf %12, %13 : vector<2x32xf32>
    %c0_9 = arith.constant 0 : index
    %c0_10 = arith.constant 0 : index
    %15 = vector.load %arg4[%c0_9, %c0_10] : memref<2x32xf32, #tpu.memory_space<vmem>>, vector<2x32xf32>
    tpu.vector_store %arg4[%c0_9, %c0_10], %14 {strides = array<i32>} : memref<2x32xf32, #tpu.memory_space<vmem>>, vector<2x32xf32>,
    return
  }
}

</mosaic_0001>

<bundles_post_ra>
// kernel: sentence_encoder.1
= control target key start
LH: loop header
LB: loop body
LE: loop exit
PB: predicated region body
PF: predicated region fallthrough
CT: control target
= control target key end

     0   :  { %v187_v2 = vmov 0   ;;  %s245_s0 = inlined_call_operand.vmem [shape: s32[16,1], index: 0, kind: input, shape index: {}]   ;;  %s246_s1 = inlined_call_operand.vmem [shape: f32[16,32], index: 1, kind: input, shape index: {}]   ;;  %s247_s2 = inlined_call_operand.vmem [shape: f32[32,32], index: 2, kind: input, shape index: {}]   ;;  %s248_s3 = inlined_call_operand.vmem [shape: f32[1,32], index: 3, kind: input, shape index: {}]   ;;  %s249_s4 = inlined_call_operand.hbm [shape: f32[2,32], index: 4, kind: output, shape index: {}]  }
   0x1   :  { %v19_v0 = vld [vmem:[%s245_s0 + $0x8] sm:$0xff]  ;;  %159 = vset.pattern.permute.xlu0 %v187_v2 }
   0x2   :  { %v21_v1 = vld [vmem:[%s246_s1 + $0x8] sm:$0xff] }
   0x3   :  { %150 = vmatpush.msra.mxu3 %v21_v1 }
   0x4   :  { %9 = vsyncpa [#allocation3], 0  ;;  %33 = vperm.xlu0 %159, %v19_v0   ;;  %62 = vmatpush.msra.mxu0 %v21_v1  ;;  %v18_v3 = vld [vmem:[%s245_s0] sm:$0xff]  ;;  %v25_v5 = vld [vmem:[%s247_s2 + $0x18] sm:$0xff]  ;;  %v27_v8 = vlaneseq  ;;  %vm41_vm0 = vcmask 130048   ;;  %v188_v11 = vmov 0.0  }
   0x5   :  { %v20_v4 = vld [vmem:[%s246_s1] sm:$0xff]  ;;  %v24_v6 = vld [vmem:[%s247_s2 + $0x10] sm:$0xff]  ;;  %152 = vmatpush.msra.mxu2 %v25_v5  ;;  %90 = vmatpush.msra.mxu1 %v25_v5  ;;  %v23_v7 = vld [vmem:[%s247_s2 + $0x8] sm:$0xff]  ;;  %vm71_vm3 = vcmask 261120   ;;  %s189_s30 = smov [#allocation2]   ;;  %s135_s8 = sshll.u32 %s249_s4, 4  ;;  %s136_s8 = int_to_ptr.hbm [resolvable:$true] %s135_s8 }
   0x6   :  { %151 = vmatpush.msra.mxu3 %v20_v4  ;;  %63 = vmatpush.msra.mxu0 %v20_v4  ;;  %v28_v9 = vand.u32 127, %v27_v8  ;;  %v22_v15 = vld [vmem:[%s247_s2] sm:$0xff]  ;;  %s133_s5 = sshll.u32 %s189_s30, 4  ;;  %vm123_vm4 = vcmask 1041409   ;;  %vm126_vm5 = vcmask 254976   ;;  %s134_s5 = int_to_ptr.vmem [resolvable:$true] %s133_s5 }
   0x7   :  { %153 = vmatpush.msra.mxu2 %v24_v6  ;;  %91 = vmatpush.msra.mxu1 %v24_v6  ;;  %v160_v33 = vld [vmem:[%s248_s3] ss:$0 sm:$0xff] }
   0x9   :  { %154 = vmatpush.msra.mxu2 %v23_v7  ;;  %92 = vmatpush.msra.mxu1 %v23_v7 }
   0xb   :  { %155 = vmatpush.msra.mxu2 %v22_v15  ;;  %93 = vmatpush.msra.mxu1 %v22_v15 }
   0xc   :  { %30 = vperm.xlu0 %159, %v18_v3  }
  0x76   :  { %v34_v10 = vpop.permute.xlu0 %33 }
  0x77   :  { %vm36_vm1 = vcmp.eq.s32.totalorder %v28_v9, %v34_v10 }
  0x78   :  { %v145_v12 = vsel %vm36_vm1, 1.0, %v188_v11 }
  0x79   :  { %147 = vmatmul.msk.f32.vlgmr.msra.gmra.mxu3 %vm41_vm0, %v145_v12 }
  0x7e   :  { %v31_v13 = vpop.permute.xlu0 %30 }
  0x7f   :  { %vm35_vm2 = vcmp.eq.s32.totalorder %v28_v9, %v31_v13 }
  0x80   :  { %v144_v14 = vsel %vm35_vm2, 1.0, %v188_v11 }
  0x81   :  { %146 = vmatmul.msk.f32.vlgmr.msra.gmra.mxu0 %vm41_vm0, %v144_v14 }
  0xfc   :  { %v68_v16 = vpop.f32.mrf.mxu3 }
  0xfd   :  { %149 = vmatmul.msk.f32.vlgmr.msra.gmra.mxu2 %vm71_vm3, %v68_v16 }
  0xfe   :  { %v65_v17 = vpop.f32.mrf.mxu0 }
  0xff   :  { %148 = vmatmul.msk.f32.vlgmr.msra.gmra.mxu1 %vm71_vm3, %v65_v17 }
 0x17c   :  { %v95_v18 = vpop.f32.mrf.mxu1 }
 0x17d   :  { %v101_v19 = vsel %vm71_vm3, %v95_v18, -inf }
 0x17e   :  { %v102_v20 = vrot.slane %v101_v19, 4 }
 0x180   :  { %v103_v21 = vmax.f32 %v101_v19, %v102_v20  ;;  %v98_v22 = vpop.f32.mrf.mxu2 }
 0x181   :  { %v108_v23 = vsel %vm71_vm3, %v98_v22, -inf }
 0x182   :  { %v104_v24 = vrot.slane %v103_v21, 2  ;;  %v109_v25 = vrot.slane %v108_v23, 4 }
 0x184   :  { %v105_v26 = vmax.f32 %v103_v21, %v104_v24  ;;  %v110_v27 = vmax.f32 %v108_v23, %v109_v25 }
 0x186   :  { %v111_v28 = vrot.slane %v110_v27, 2  ;;  %v106_v29 = vrot.slane %v105_v26, 1 }
 0x188   :  { %v112_v30 = vmax.f32 %v110_v27, %v111_v28  ;;  %v107_v32 = vmax.f32 %v105_v26, %v106_v29 }
 0x18a   :  { %v113_v31 = vrot.slane %v112_v30, 1  ;;  %v118_v36 = vadd.f32 %v160_v33, %v107_v32 }
 0x18c   :  { %v114_v34 = vmax.f32 %v112_v30, %v113_v31 }
 0x18e   :  { %v119_v35 = vadd.f32 %v160_v33, %v114_v34 }
 0x190   :  { %v122_v37 = vrot.slane %v119_v35, 7 }
 0x192   :  { %v124_v38 = vsel %vm123_vm4, %v122_v37, %v118_v36 }
 0x193   :  { %127 = vst.msk [vmem:[#allocation2] sm:$0x3] %vm126_vm5, %v124_v38 }
 0x194   :  { %138 = dma.vmem_to_hbm [thread:$0]  %s134_s5, 32, %s136_s8, [#allocation3]  }
 0x195   :  { %185 = dma.done.wait [#allocation3], 32  }
 0x196   :  { %186 = vsyncadd [#allocation3], 4294967264 }
 0x197   :  { %143 = vsyncpa [#allocation3], 1 }

</bundles_post_ra>
